<compile_context>
chip_gen: v7x
topology: tpu7x:2x2x1
jax: 0.10.0
libtpu: 0.0.40
codegen_flags: <defaults>
</compile_context>

<pallas_src>
import functools

import jax
import jax.numpy as jnp
from jax.experimental import pallas as pl
from jax.experimental.pallas import tpu as pltpu


_VMEM_BUDGET = 24 * 1024 * 1024   # target for the double-buffered working set
_VMEM_LIMIT = 32 * 1024 * 1024    # explicit scoped-VMEM limit (safe v5e/v6e/v7x)


def _round_up(x: int, m: int) -> int:
    return ((x + m - 1) // m) * m


def _cdiv(a: int, b: int) -> int:
    return (a + b - 1) // b


def _choose_tiles(B, Cin, Cout, out_itemsize, tm_req, tn_req, tk_req):
    """Pick lane/sublane-aligned tiles that minimize padding, guarantee >=2
    parallel blocks for megacore when possible, and fit the VMEM budget."""
    Mp0 = _round_up(B, 16)       # bf16 sublane packing
    Np0 = _round_up(Cout, 128)   # lane-dense output / full MXU columns
    Kp0 = _round_up(Cin, 128)

    def balance(dim, t_req, align):
        g = _cdiv(dim, max(align, min(t_req, dim)))
        t = _round_up(_cdiv(dim, g), align)
        return t, g

    tm, gm = balance(Mp0, tm_req, 16)
    tn, gn = balance(Np0, tn_req, 128)
    tk, gk = balance(Kp0, tk_req, 128)

    # v7x megacore: give the parallel (M, N) grid at least two blocks when the
    # problem is big enough to split, so both TensorCores get work.
    if gm * gn < 2:
        if Np0 >= 256:
            tn, gn = balance(Np0, _round_up(_cdiv(Np0, 2), 128), 128)
        elif Mp0 >= 32:
            tm, gm = balance(Mp0, _round_up(_cdiv(Mp0, 2), 16), 16)

    def vmem_bytes():
        return (2 * tm * tk * 2               # x tiles (bf16, double-buffered)
                + 2 * tk * tn * 2             # W tiles (bf16, double-buffered)
                + 2 * tm * tn * out_itemsize  # output tiles
                + tm * tn * 4                 # f32 accumulator scratch
                + 2 * tn * 4)                 # bias tiles

    for _ in range(64):
        if vmem_bytes() <= _VMEM_BUDGET:
            break
        if tk > 128:
            tk, gk = balance(Kp0, max(128, tk // 2), 128)
        elif tn > 128:
            tn, gn = balance(Np0, max(128, tn // 2), 128)
        elif tm > 16:
            tm, gm = balance(Mp0, max(16, tm // 2), 16)
        else:
            break

    return tm, tn, tk, tm * gm, tn * gn, tk * gk


def _nonlinear_kernel_fused(x_ref, w_ref, b_ref, o_ref):
    """Single-K fast path: whole reduction fits one tile -> no f32 scratch."""
    y = jnp.dot(x_ref[...], w_ref[...], preferred_element_type=jnp.float32)
    y = y + b_ref[...].astype(jnp.float32)          # (1, tn) broadcast
    o_ref[...] = jnp.maximum(y, 0.0).astype(o_ref.dtype)


def _nonlinear_kernel_acc(x_ref, w_ref, b_ref, o_ref, acc_ref):
    """K-tiled path: pure MXU accumulate; bias/ReLU/cast only in the epilogue."""
    k = pl.program_id(2)

    @pl.when(k == 0)
    def _():
        acc_ref[...] = jnp.zeros_like(acc_ref)

    acc_ref[...] += jnp.dot(
        x_ref[...], w_ref[...], preferred_element_type=jnp.float32
    )

    @pl.when(k == pl.num_programs(2) - 1)
    def _():
        y = acc_ref[...] + b_ref[...].astype(jnp.float32)
        o_ref[...] = jnp.maximum(y, 0.0).astype(o_ref.dtype)


@functools.partial(jax.jit, static_argnames=("tm", "tn", "tk"))
def nonlinear_forward(x, w, b, *, tm=512, tn=512, tk=1024):
    """y = relu(x @ w + b).

    x: (..., Cin)   w: (Cin, Cout)   b: (Cout,)
    Returns (..., Cout) in x.dtype.
    """
    orig_shape = x.shape
    Cin = orig_shape[-1]
    Cout = w.shape[1]
    out_dtype = x.dtype
    out_itemsize = jnp.dtype(out_dtype).itemsize

    x2 = x.reshape(-1, Cin)
    B = x2.shape[0]

    tm, tn, tk, Mp, Np, Kp = _choose_tiles(
        B, Cin, Cout, out_itemsize, tm, tn, tk
    )
    gm, gn, gk = Mp // tm, Np // tn, Kp // tk

    # bf16 operands for the MXU, f32 accumulation.  Cast / pad only when
    # actually needed; for aligned shapes with pre-converted bf16 weights this
    # is a no-op (no extra HBM round trip per call).
    xb = x2 if x2.dtype == jnp.bfloat16 else x2.astype(jnp.bfloat16)
    if (Mp, Kp) != (B, Cin):
        xb = jnp.pad(xb, ((0, Mp - B), (0, Kp - Cin)))
    wb = w if w.dtype == jnp.bfloat16 else w.astype(jnp.bfloat16)
    if (Kp, Np) != (Cin, Cout):
        wb = jnp.pad(wb, ((0, Kp - Cin), (0, Np - Cout)))
    bb = b.astype(jnp.float32)
    if Np != Cout:
        bb = jnp.pad(bb, (0, Np - Cout))
    bb = bb.reshape(1, Np)

    # Real HBM traffic: x is streamed gn times, W is streamed gm times.
    cost = pl.CostEstimate(
        flops=2 * Mp * Np * Kp,
        transcendentals=0,
        bytes_accessed=(xb.size * 2 * gn + wb.size * 2 * gm
                        + bb.size * 4 + Mp * Np * out_itemsize),
    )
    compiler_params = pltpu.CompilerParams(
        dimension_semantics=(("parallel", "parallel") if gk == 1
                             else ("parallel", "parallel", "arbitrary")),
        vmem_limit_bytes=_VMEM_LIMIT,
    )

    if gk == 1:
        # No-accumulator fast path (Cin <= tk): 2-D grid, fused epilogue.
        grid_spec = pltpu.PrefetchScalarGridSpec(
            num_scalar_prefetch=0,
            grid=(gm, gn),
            in_specs=[
                pl.BlockSpec((tm, tk), lambda i, j: (i, 0)),   # x tile
                pl.BlockSpec((tk, tn), lambda i, j: (0, j)),   # W tile
                pl.BlockSpec((1, tn), lambda i, j: (0, j)),    # bias row
            ],
            out_specs=pl.BlockSpec((tm, tn), lambda i, j: (i, j)),
        )
        kernel = _nonlinear_kernel_fused
    else:
        grid_spec = pltpu.PrefetchScalarGridSpec(
            num_scalar_prefetch=0,
            grid=(gm, gn, gk),
            in_specs=[
                pl.BlockSpec((tm, tk), lambda i, j, k: (i, k)),  # x tile
                pl.BlockSpec((tk, tn), lambda i, j, k: (k, j)),  # W tile
                pl.BlockSpec((1, tn), lambda i, j, k: (0, j)),   # bias (K-invariant)
            ],
            out_specs=pl.BlockSpec((tm, tn), lambda i, j, k: (i, j)),
            scratch_shapes=[pltpu.VMEM((tm, tn), jnp.float32)],
        )
        kernel = _nonlinear_kernel_acc

    y_pad = pl.pallas_call(
        kernel,
        out_shape=jax.ShapeDtypeStruct((Mp, Np), out_dtype),
        grid_spec=grid_spec,
        compiler_params=compiler_params,
        cost_estimate=cost,
    )(xb, wb, bb)

    y = y_pad if (Mp, Np) == (B, Cout) else y_pad[:B, :Cout]
    return y.reshape(orig_shape[:-1] + (Cout,))


if __name__ == "__main__":
    key = jax.random.PRNGKey(0)

    def ref(x, w, b):
        # Reference with the same bf16 operand rounding / f32 accumulation.
        xf = x.astype(jnp.bfloat16).astype(jnp.float32)
        wf = w.astype(jnp.bfloat16).astype(jnp.float32)
        return jnp.maximum(xf @ wf + b, 0.0)

    # Case 1: module-sized shapes (single-K fused fast path, 2-D grid).
    batch, cin, cout = 8, 32, 64
    k1, k2, k3, key = jax.random.split(key, 4)
    bound = 1.0 / (cin ** 0.5)
    x = jax.random.normal(k1, (batch, cin), dtype=jnp.float32)
    w = jax.random.uniform(k2, (cin, cout), minval=-bound, maxval=bound,
                           dtype=jnp.float32)
    b = jax.random.uniform(k3, (cout,), minval=-bound, maxval=bound,
                           dtype=jnp.float32)
    y = nonlinear_forward(x, w, b)
    jax.block_until_ready(y)
    assert y.shape == (batch, cout)
    assert jnp.allclose(y, ref(x, w, b), atol=2e-3, rtol=2e-3), "case1 mismatch"

    # Case 2: exercises the K-tiled accumulator path + megacore N split.
    batch2, cin2, cout2 = 16, 256, 384
    k1, k2, k3, key = jax.random.split(key, 4)
    bound2 = 1.0 / (cin2 ** 0.5)
    x2 = jax.random.normal(k1, (batch2, cin2), dtype=jnp.float32)
    w2 = jax.random.uniform(k2, (cin2, cout2), minval=-bound2, maxval=bound2,
                            dtype=jnp.float32)
    b2 = jax.random.uniform(k3, (cout2,), minval=-bound2, maxval=bound2,
                            dtype=jnp.float32)
    y2 = nonlinear_forward(x2, w2, b2, tk=128)
    jax.block_until_ready(y2)
    assert y2.shape == (batch2, cout2)
    assert jnp.allclose(y2, ref(x2, w2, b2), atol=2e-3, rtol=2e-3), "case2 mismatch"

    print("KERNEL_OK")
</pallas_src>

<mosaic_0001>
module attributes {stable_mosaic.version = 11 : i64} {
  func.func @_nonlinear_kernel_fused(%arg0: i32, %arg1: i32, %arg2: memref<16x128xbf16, #tpu.memory_space<vmem>>, %arg3: memref<128x128xbf16, #tpu.memory_space<vmem>>, %arg4: memref<1x128xf32, #tpu.memory_space<vmem>>, %arg5: memref<16x128xf32, #tpu.memory_space<vmem>>) attributes {dimension_semantics = [#tpu.dimension_semantics<parallel>, #tpu.dimension_semantics<parallel>], iteration_bounds = array<i64: 1, 1>, scalar_prefetch = 0 : i64, scratch_operands = 0 : i64, tpu.core_type = #tpu.core_type<tc>, window_params = [{transform_indices = @transform_0, window_bounds = array<i64: 16, 128>}, {transform_indices = @transform_1, window_bounds = array<i64: 128, 128>}, {transform_indices = @transform_2, window_bounds = array<i64: 1, 128>}, {transform_indices = @transform_3, window_bounds = array<i64: 16, 128>}]} {
    %c0 = arith.constant 0 : index
    %c0_0 = arith.constant 0 : index
    %0 = vector.load %arg2[%c0, %c0_0] : memref<16x128xbf16, #tpu.memory_space<vmem>>, vector<16x128xbf16>
    %c0_1 = arith.constant 0 : index
    %c0_2 = arith.constant 0 : index
    %1 = vector.load %arg3[%c0_1, %c0_2] : memref<128x128xbf16, #tpu.memory_space<vmem>>, vector<128x128xbf16>
    %cst = arith.constant dense<0.000000e+00> : vector<16x128xf32>
    %2 = tpu.matmul %0, %1, %cst {dimension_numbers = #tpu.dot_dimension_numbers<[1], [0], [0], [1], [0, 0, 1, 1], [], []>} : vector<16x128xbf16>, vector<128x128xbf16>, vector<16x128xf32> -> vector<16x128xf32>
    %c0_3 = arith.constant 0 : index
    %c0_4 = arith.constant 0 : index
    %3 = vector.load %arg4[%c0_3, %c0_4] : memref<1x128xf32, #tpu.memory_space<vmem>>, vector<1x128xf32>
    %4 = vector.broadcast %3 : vector<1x128xf32> to vector<16x128xf32>
    %5 = arith.addf %2, %4 : vector<16x128xf32>
    %cst_5 = arith.constant 0.000000e+00 : f32
    %6 = vector.broadcast %cst_5 : f32 to vector<16x128xf32>
    %7 = arith.maximumf %5, %6 : vector<16x128xf32>
    %c0_6 = arith.constant 0 : index
    %c0_7 = arith.constant 0 : index
    %8 = vector.load %arg5[%c0_6, %c0_7] : memref<16x128xf32, #tpu.memory_space<vmem>>, vector<16x128xf32>
    tpu.vector_store %arg5[%c0_6, %c0_7], %7 {strides = array<i32>} : memref<16x128xf32, #tpu.memory_space<vmem>>, vector<16x128xf32>,
    return
  }
  func.func @transform_0(%arg0: i32, %arg1: i32) -> (i32, i32) {
    %c0_i32 = arith.constant 0 : i32
    %c0_i32_0 = arith.constant 0 : i32
    return %arg0, %c0_i32 : i32, i32
  }
  func.func @transform_1(%arg0: i32, %arg1: i32) -> (i32, i32) {
    %c0_i32 = arith.constant 0 : i32
    %c0_i32_0 = arith.constant 0 : i32
    return %c0_i32, %arg1 : i32, i32
  }
  func.func @transform_2(%arg0: i32, %arg1: i32) -> (i32, i32) {
    %c0_i32 = arith.constant 0 : i32
    %c0_i32_0 = arith.constant 0 : i32
    return %c0_i32, %arg1 : i32, i32
  }
  func.func @transform_3(%arg0: i32, %arg1: i32) -> (i32, i32) {
    %c0_i32 = arith.constant 0 : i32
    return %arg0, %arg1 : i32, i32
  }
}

</mosaic_0001>

<bundles_post_ra>
// kernel: nonlinear_forward.1
= control target key start
LH: loop header
LB: loop body
LE: loop exit
PB: predicated region body
PF: predicated region fallthrough
CT: control target
= control target key end

     0   :  { %v193_v0 = vmov 0.0   ;;  %vm194_vm0 = vmmov 0   ;;  %s251_s1 = inlined_call_operand.vmem [shape: bf16[128,128], index: 1, kind: input, shape index: {}]   ;;  %s252_s0 = inlined_call_operand.vmem [shape: bf16[16,128], index: 0, kind: input, shape index: {}]   ;;  %s253_s2 = inlined_call_operand.vmem [shape: f32[1,128], index: 2, kind: input, shape index: {}]   ;;  %s254_s3 = inlined_call_operand.vmem [shape: f32[16,128], index: 3, kind: output, shape index: {}]  }
   0x1   :  { %162 = vmatprep.subr.bf16.mxu0 %v193_v0  ;;  %v184_v1 = vld [vmem:[%s251_s1] sm:$0xff]   ;;  %178 = vmatprep.mubr.msk.bf16.mxu0 %vm194_vm0, %v193_v0  ;;  %v185_v2 = vld [vmem:[%s251_s1 + $0x8] sm:$0xff]   ;;  %v186_v3 = vld [vmem:[%s251_s1 + $0x10] sm:$0xff]  }
   0x2   :  { %163 = vmatpush3.bf16.msra.mxu0 %v184_v1  ;;  %v187_v4 = vld [vmem:[%s251_s1 + $0x18] sm:$0xff]   ;;  %v188_v5 = vld [vmem:[%s251_s1 + $0x20] sm:$0xff]   ;;  %v189_v6 = vld [vmem:[%s251_s1 + $0x28] sm:$0xff]  }
   0x3   :  { %164 = vmatprep.subr.bf16.mxu0 %v193_v0  ;;  %v190_v7 = vld [vmem:[%s251_s1 + $0x30] sm:$0xff]   ;;  %v191_v8 = vld [vmem:[%s251_s1 + $0x38] sm:$0xff]   ;;  %v192_v9 = vld [vmem:[%s252_s0] sm:$0xff]  }
   0x4   :  { %v143_v10 = vld [vmem:[%s253_s2] ss:$0 sm:$0xff] }
   0x6   :  { %165 = vmatpush3.bf16.msra.mxu0 %v185_v2 }
   0x7   :  { %166 = vmatprep.subr.bf16.mxu0 %v193_v0 }
   0xa   :  { %167 = vmatpush3.bf16.msra.mxu0 %v186_v3 }
   0xb   :  { %168 = vmatprep.subr.bf16.mxu0 %v193_v0 }
   0xe   :  { %169 = vmatpush3.bf16.msra.mxu0 %v187_v4 }
   0xf   :  { %170 = vmatprep.subr.bf16.mxu0 %v193_v0 }
  0x12   :  { %171 = vmatpush3.bf16.msra.mxu0 %v188_v5 }
  0x13   :  { %172 = vmatprep.subr.bf16.mxu0 %v193_v0 }
  0x16   :  { %173 = vmatpush3.bf16.msra.mxu0 %v189_v6 }
  0x17   :  { %174 = vmatprep.subr.bf16.mxu0 %v193_v0 }
  0x1a   :  { %175 = vmatpush3.bf16.msra.mxu0 %v190_v7 }
  0x1b   :  { %176 = vmatprep.subr.bf16.mxu0 %v193_v0 }
  0x1e   :  { %177 = vmatpush3.bf16.msra.mxu0 %v191_v8 }
  0x21   :  { %179 = vmatmul.mubr.bf16.vlgmr.msra.gmra.mrb[0].mxu0 %v192_v9 }
  0xf4   :  { %v128_v11 = vpop.f32.mrb[0].mxu0 }
  0xf5   :  { %v129_v12 = vadd.f32 %v143_v10, %v128_v11  ;;  %v180_v13 = vpop.f32.mrb[1].mxu0 }
  0xf6   :  { %v131_v14 = vpop.f32.mrb[2].mxu0 }
  0xf7   :  { %v135_v15 = vmax.f32 %v129_v12, 0.0  ;;  %v132_v16 = vadd.f32 %v143_v10, %v131_v14  ;;  %v181_v17 = vpop.f32.mrb[3].mxu0 }
  0xf9   :  { %137 = vst [vmem:[%s254_s3] sm:$0xff] %v135_v15  ;;  %v136_v18 = vmax.f32 %v132_v16, 0.0 }
  0xfb   :  { %138 = vst [vmem:[%s254_s3 + $0x8] sm:$0xff] %v136_v18 }

</bundles_post_ra>
